<compile_context>
chip_gen: v5e
topology: v5e:2x2
jax: 0.10.0
libtpu: 0.0.40
codegen_flags: <defaults>
</compile_context>

<pallas_src>
from functools import partial

import jax
import jax.numpy as jnp
from jax.experimental import pallas as pl
from jax.experimental.pallas import tpu as pltpu

N_IN = 86      # in_channels
N_OUT = 2064   # out_channels
LANE = 128


def conv1x1_kernel(x_ref, w_ref, b_ref, o_ref):
    # x_ref: (1, C_in) f32        -- activations (cast to bf16 here, in-kernel)
    # w_ref: (C_in, C_out_pad) bf16
    # b_ref: (1, C_out_pad) f32   -- bias kept in f32 (exact)
    # o_ref: (1, C_out_pad) f32
    x = x_ref[...].astype(w_ref.dtype)
    acc = jnp.dot(x, w_ref[...], preferred_element_type=jnp.float32)  # MXU
    o_ref[...] = acc + b_ref[...]                                     # VPU


def pack_conv1x1_params(weight, bias, w_dtype=jnp.bfloat16, lane=LANE):
    """One-time parameter packing (module build time, NOT per call).

    weight: (C_out, C_in, 1, 1) f32, bias: (C_out,) f32
    returns:
      w_pad: (C_in, C_out_pad) `w_dtype`  -- transposed, lane-padded weights
      b_pad: (1,  C_out_pad) f32          -- lane-padded bias (exact f32)
    """
    c_out, c_in = weight.shape[0], weight.shape[1]
    c_out_pad = ((c_out + lane - 1) // lane) * lane
    w2d = weight.reshape(c_out, c_in).T.astype(w_dtype)        # (C_in, C_out)
    w_pad = jnp.zeros((c_in, c_out_pad), w_dtype).at[:, :c_out].set(w2d)
    b_pad = jnp.zeros((1, c_out_pad), jnp.float32).at[:, :c_out].set(
        bias.reshape(1, c_out).astype(jnp.float32))
    return w_pad, b_pad


@partial(jax.jit, static_argnames=("c_out",))
def conv2d_1x1(x_nchw, w_pad, b_pad, *, c_out=N_OUT):
    """x_nchw: (N, C_in, 1, 1) f32; w_pad/b_pad from pack_conv1x1_params."""
    n, c_in, h, w = x_nchw.shape
    assert h == 1 and w == 1, "this kernel specializes H = W = 1"
    m = n * h * w
    c_out_pad = w_pad.shape[1]

    # H = W = 1 -> metadata-only reshape, no transpose / no data movement.
    x2d = x_nchw.reshape(m, c_in)

    cost = pl.CostEstimate(
        flops=2 * m * c_in * c_out_pad,
        transcendentals=0,
        bytes_accessed=(x2d.size * 4
                        + w_pad.size * jnp.dtype(w_pad.dtype).itemsize
                        + b_pad.size * 4
                        + m * c_out_pad * 4),
    )

    # Gridless call: whole (tiny) operands live in VMEM, single-buffered,
    # no grid / pipelining machinery around one MXU matmul + VPU bias add.
    out_pad = pl.pallas_call(
        conv1x1_kernel,
        out_shape=jax.ShapeDtypeStruct((m, c_out_pad), jnp.float32),
        cost_estimate=cost,
    )(x2d, w_pad, b_pad)

    # Drop the lane padding and return NCHW (H = W = 1 -> plain reshape).
    return out_pad[:, :c_out].reshape(n, c_out, 1, 1)


if __name__ == "__main__":
    key = jax.random.PRNGKey(0)
    kx, kw, kb = jax.random.split(key, 3)

    # Input matching the module: torch.randn([1, 86, 1, 1])
    x = jax.random.normal(kx, (1, N_IN, 1, 1), dtype=jnp.float32)

    # Deterministic parameter init (Conv2d default-style uniform bounds).
    fan_in = N_IN * 1 * 1
    bound = 1.0 / (fan_in ** 0.5)
    weight = jax.random.uniform(kw, (N_OUT, N_IN, 1, 1), jnp.float32,
                                minval=-bound, maxval=bound)
    bias = jax.random.uniform(kb, (N_OUT,), jnp.float32,
                              minval=-bound, maxval=bound)

    # One-time packing (hoisted out of the per-call path).
    w_pad, b_pad = pack_conv1x1_params(weight, bias, w_dtype=jnp.bfloat16)

    out = conv2d_1x1(x, w_pad, b_pad, c_out=N_OUT)
    out = jax.block_until_ready(out)
    assert out.shape == (1, N_OUT, 1, 1), out.shape

    # Reference 1 (tight): same bf16-quantized operands, f32 accumulation,
    # exact f32 bias.
    x_bf = x.reshape(1, N_IN).astype(jnp.bfloat16).astype(jnp.float32)
    w_bf = weight.reshape(N_OUT, N_IN).astype(jnp.bfloat16).astype(jnp.float32)
    ref_q = (x_bf @ w_bf.T + bias).reshape(1, N_OUT, 1, 1)
    assert jnp.allclose(out, ref_q, atol=1e-3, rtol=1e-3)

    # Reference 2 (module math, full f32): only the bf16 cast of x and W
    # contributes error now (bias is exact), so the tolerance can be tighter
    # than before.
    ref = (x.reshape(1, N_IN) @ weight.reshape(N_OUT, N_IN).T + bias).reshape(
        1, N_OUT, 1, 1)
    assert jnp.allclose(out, ref, atol=5e-2, rtol=5e-2)

    print("KERNEL_OK")
</pallas_src>

<mosaic_0001>
module attributes {stable_mosaic.version = 11 : i64} {
  func.func @conv1x1_kernel(%arg0: memref<1x86xf32, #tpu.memory_space<vmem>>, %arg1: memref<86x2176xbf16, #tpu.memory_space<vmem>>, %arg2: memref<1x2176xf32, #tpu.memory_space<vmem>>, %arg3: memref<1x2176xf32, #tpu.memory_space<vmem>>) attributes {dimension_semantics = [], scalar_prefetch = 0 : i64, scratch_operands = 0 : i64, tpu.core_type = #tpu.core_type<tc>} {
    %c0 = arith.constant 0 : index
    %c0_0 = arith.constant 0 : index
    %0 = vector.load %arg0[%c0, %c0_0] : memref<1x86xf32, #tpu.memory_space<vmem>>, vector<1x86xf32>
    %1 = arith.truncf %0 : vector<1x86xf32> to vector<1x86xbf16>
    %c0_1 = arith.constant 0 : index
    %c0_2 = arith.constant 0 : index
    %2 = vector.load %arg1[%c0_1, %c0_2] : memref<86x2176xbf16, #tpu.memory_space<vmem>>, vector<86x2176xbf16>
    %cst = arith.constant dense<0.000000e+00> : vector<1x2176xf32>
    %3 = tpu.matmul %1, %2, %cst {dimension_numbers = #tpu.dot_dimension_numbers<[1], [0], [0], [1], [0, 0, 1, 1], [], []>} : vector<1x86xbf16>, vector<86x2176xbf16>, vector<1x2176xf32> -> vector<1x2176xf32>
    %c0_3 = arith.constant 0 : index
    %c0_4 = arith.constant 0 : index
    %4 = vector.load %arg2[%c0_3, %c0_4] : memref<1x2176xf32, #tpu.memory_space<vmem>>, vector<1x2176xf32>
    %5 = arith.addf %3, %4 : vector<1x2176xf32>
    %c0_5 = arith.constant 0 : index
    %c0_6 = arith.constant 0 : index
    %6 = vector.load %arg3[%c0_5, %c0_6] : memref<1x2176xf32, #tpu.memory_space<vmem>>, vector<1x2176xf32>
    tpu.vector_store %arg3[%c0_5, %c0_6], %5 {strides = array<i32>} : memref<1x2176xf32, #tpu.memory_space<vmem>>, vector<1x2176xf32>,
    return
  }
}

</mosaic_0001>

<bundles_post_ra>
// kernel: conv2d_1x1.1
= control target key start
LH: loop header
LB: loop body
LE: loop exit
PB: predicated region body
PF: predicated region fallthrough
CT: control target
= control target key end

     0   :  { %8 = vsyncpa [#allocation3], 0  ;;  %s1649_s0 = inlined_call_operand.hbm [shape: f32[1,86], index: 0, kind: input, shape index: {}]   ;;  %s1650_s1 = inlined_call_operand.hbm [shape: bf16[86,2176], index: 1, kind: input, shape index: {}]   ;;  %s1651_s2 = inlined_call_operand.hbm [shape: f32[1,2176], index: 2, kind: input, shape index: {}]   ;;  %s1652_s3 = inlined_call_operand.vmem [shape: f32[1,2176], index: 3, kind: output, shape index: {}]  }
   0x1   :  { %9 = vsyncpa [#allocation5], 0  ;;  %s25_s14 = sshll.u32 %s1650_s1, 4  ;;  %s1539_s15 = smov [#allocation4]   ;;  %s26_s14 = int_to_ptr.hbm [resolvable:$true] %s25_s14 }
   0x2   :  { %s27_s16 = sshll.u32 %s1539_s15, 4  ;;  %s15_s19 = sshll.u32 %s1649_s0, 4  ;;  %s28_s16 = int_to_ptr.vmem [resolvable:$true] %s27_s16  ;;  %s16_s19 = int_to_ptr.hbm [resolvable:$true] %s15_s19 }
   0x3   :  { %s1540_s20 = smov 1088   ;;  %s1541_s21 = smov 68  }
   0x4   :  { %33 = dma.hbm_to_vmem [thread:$0]  %s26_s14, 11968, %s28_s16, [#allocation5], %s1540_s20, %s1540_s20, %s1541_s21  }
   0x5   :  { %s1542_s22 = smov [#allocation2]   ;;  %s39_s26 = sshll.u32 %s1651_s2, 4  ;;  %s40_s26 = int_to_ptr.hbm [resolvable:$true] %s39_s26 }
   0x6   :  { %s17_s23 = sshll.u32 %s1542_s22, 4  ;;  %s1543_s1 = smov [#allocation6]   ;;  %s18_s23 = int_to_ptr.vmem [resolvable:$true] %s17_s23 }
   0x7   :  { %20 = dma.hbm_to_vmem [thread:$0]  %s16_s19, 16, %s18_s23, [#allocation3]  }
   0x8   :  { %s41_s27 = sshll.u32 %s1543_s1, 4  ;;  %s42_s27 = int_to_ptr.vmem [resolvable:$true] %s41_s27 }
   0x9   :  { %44 = dma.hbm_to_vmem [thread:$0]  %s40_s26, 272, %s42_s27, [#allocation5]  }
   0xa   :  { %1535 = dma.done.wait [#allocation3], 16  }
   0xb   :  { %1536 = vsyncadd [#allocation3], 4294967280 }
   0xc   :  { %1537 = dma.done.wait [#allocation5], 12240  }
   0xd   :  { %1538 = vsyncadd [#allocation5], 4294955056  ;;  %v150_v0 = vld [vmem:[#allocation4 + $0x2a8] sm:$0x77]  ;;  %v151_v1 = vld [vmem:[#allocation4 + $0x2b0] sm:$0x77] }
   0xe   :  { %v431_v2 = vunpack.c.l.b16 %v150_v0  ;;  %v433_v3 = vunpack.c.l.b16 %v151_v1  ;;  %v434_v4 = vunpack.c.h.b16 %v151_v1  ;;  %v432_v5 = vunpack.c.h.b16 %v150_v0  ;;  %v1289_v6 = vld [vmem:[#allocation4 + $0x220] sm:$0xf]  ;;  %v1448_v10 = vld [vmem:[#allocation4 + $0x260] sm:$0xf0]  ;;  %v1297_v11 = vld [vmem:[#allocation4 + $0x228] sm:$0xf] }
   0xf   :  { %vm676_vm0 = vcmask 1042432   ;;  %v1449_v12 = vld [vmem:[#allocation4 + $0x268] sm:$0xf0]  ;;  %v1299_v14 = vld [vmem:[#allocation4 + $0x26c] sm:$0xf0]  ;;  %v1290_v21 = vor.u32 %v1448_v10, %v1289_v6  ;;  %vm672_vm1 = vcmask 703488  }
  0x10   :  { %v533_v7 = vpack.c.b16 %v431_v2, %v431_v2  ;;  %v535_v8 = vpack.c.b16 %v433_v3, %v433_v3  ;;  %v536_v9 = vpack.c.b16 %v434_v4, %v434_v4  ;;  %v1441_v13 = vld [vmem:[#allocation4 + $0x22c] sm:$0xf]  ;;  %v534_v15 = vpack.c.b16 %v432_v5, %v432_v5  ;;  %v1440_v16 = vld [vmem:[#allocation4 + $0x224] sm:$0xf]  ;;  %v1291_v20 = vld [vmem:[#allocation4 + $0x264] sm:$0xf0] }
  0x11   :  { %v1298_v22 = vor.u32 %v1449_v12, %v1297_v11  ;;  %v1221_v24 = vld [vmem:[#allocation4 + $0x198] sm:$0xf]  ;;  %v1431_v25 = vld [vmem:[#allocation4 + $0x1d8] sm:$0xf0]  ;;  %v1302_v26 = vor.u32 %v1441_v13, %v1299_v14  ;;  %v1229_v27 = vld [vmem:[#allocation4 + $0x1a0] sm:$0xf]  ;;  %v1294_v30 = vor.u32 %v1440_v16, %v1291_v20 }
  0x12   :  { %v678_v17 = vsel %vm676_vm0, %v533_v7, 0  ;;  %v684_v18 = vsel %vm676_vm0, %v535_v8, 0  ;;  %v687_v19 = vsel %vm676_vm0, %v536_v9, 0  ;;  %v681_v23 = vsel %vm676_vm0, %v534_v15, 0  ;;  %v1432_v28 = vld [vmem:[#allocation4 + $0x1e0] sm:$0xf0] }
  0x13   :  { %730 = vmatpush.bf16.msra.mxu0 %v678_v17  ;;  %756 = vmatpush.bf16.msra.mxu2 %v684_v18  ;;  %v1424_v29 = vld [vmem:[#allocation4 + $0x1a4] sm:$0xf]  ;;  %v1231_v31 = vld [vmem:[#allocation4 + $0x1e4] sm:$0xf0]  ;;  %v1423_v32 = vld [vmem:[#allocation4 + $0x19c] sm:$0xf]  ;;  %v1222_v34 = vor.u32 %v1431_v25, %v1221_v24  ;;  %v1230_v35 = vor.u32 %v1432_v28, %v1229_v27 }
  0x14   :  { %769 = vmatpush.bf16.msra.mxu3 %v687_v19  ;;  %743 = vmatpush.bf16.msra.mxu1 %v681_v23  ;;  %v1223_v33 = vld [vmem:[#allocation4 + $0x1dc] sm:$0xf0]  ;;  %v1153_v36 = vld [vmem:[#allocation4 + $0x110] sm:$0xf]  ;;  %v1414_v37 = vld [vmem:[#allocation4 + $0x150] sm:$0xf0]  ;;  %v1234_v38 = vor.u32 %v1424_v29, %v1231_v31 }
  0x15   :  { %v1161_v39 = vld [vmem:[#allocation4 + $0x118] sm:$0xf]  ;;  %v1415_v40 = vld [vmem:[#allocation4 + $0x158] sm:$0xf0]  ;;  %v1226_v42 = vor.u32 %v1423_v32, %v1223_v33  ;;  %v1163_v43 = vld [vmem:[#allocation4 + $0x15c] sm:$0xf0]  ;;  %v1154_v47 = vor.u32 %v1414_v37, %v1153_v36 }
  0x16   :  { %v1407_v41 = vld [vmem:[#allocation4 + $0x11c] sm:$0xf]  ;;  %v1406_v44 = vld [vmem:[#allocation4 + $0x114] sm:$0xf]  ;;  %v1155_v45 = vld [vmem:[#allocation4 + $0x154] sm:$0xf0]  ;;  %v1162_v48 = vor.u32 %v1415_v40, %v1161_v39 }
  0x17   :  { %731 = vmatpush.bf16.msra.mxu0 %v1290_v21  ;;  %757 = vmatpush.bf16.msra.mxu2 %v1298_v22  ;;  %v1085_v46 = vld [vmem:[#allocation4 + $0x88] sm:$0xf]  ;;  %v1397_v49 = vld [vmem:[#allocation4 + $0xc8] sm:$0xf0]  ;;  %v152_v50 = vld [vmem:[#allocation4 + $0x2b8] sm:$0x77]  ;;  %v1166_v52 = vor.u32 %v1407_v41, %v1163_v43  ;;  %v1158_v56 = vor.u32 %v1406_v44, %v1155_v45 }
  0x18   :  { %770 = vmatpush.bf16.msra.mxu3 %v1302_v26  ;;  %744 = vmatpush.bf16.msra.mxu1 %v1294_v30  ;;  %v153_v51 = vld [vmem:[#allocation4 + $0x2c0] sm:$0x77]  ;;  %v1093_v53 = vld [vmem:[#allocation4 + $0x90] sm:$0xf]  ;;  %v1398_v54 = vld [vmem:[#allocation4 + $0xd0] sm:$0xf0]  ;;  %v435_v60 = vunpack.c.l.b16 %v152_v50  ;;  %v1086_v63 = vor.u32 %v1397_v49, %v1085_v46  ;;  %v436_v7 = vunpack.c.h.b16 %v152_v50 }
  0x19   :  { %v1390_v55 = vld [vmem:[#allocation4 + $0x94] sm:$0xf]  ;;  %v1095_v57 = vld [vmem:[#allocation4 + $0xd4] sm:$0xf0]  ;;  %v1389_v58 = vld [vmem:[#allocation4 + $0x8c] sm:$0xf]  ;;  %v437_v61 = vunpack.c.l.b16 %v153_v51  ;;  %v438_v62 = vunpack.c.h.b16 %v153_v51  ;;  %v1094_v0 = vor.u32 %v1398_v54, %v1093_v53 }
  0x1a   :  { %v1087_v59 = vld [vmem:[#allocation4 + $0xcc] sm:$0xf0]  ;;  %v1017_v1 = vld [vmem:[#allocation4] sm:$0xf]  ;;  %v1098_v2 = vor.u32 %v1390_v55, %v1095_v57  ;;  %v1380_v3 = vld [vmem:[#allocation4 + $0x40] sm:$0xf0]  ;;  %v537_v10 = vpack.c.b16 %v435_v60, %v435_v60  ;;  %v538_v21 = vpack.c.b16 %v436_v7, %v436_v7 }
  0x1b   :  { %732 = vmatpush.bf16.msra.mxu0 %v1222_v34  ;;  %758 = vmatpush.bf16.msra.mxu2 %v1230_v35  ;;  %v1025_v4 = vld [vmem:[#allocation4 + $0x8] sm:$0xf]  ;;  %v1381_v5 = vld [vmem:[#allocation4 + $0x48] sm:$0xf0]  ;;  %v1090_v6 = vor.u32 %v1389_v58, %v1087_v59  ;;  %v1027_v9 = vld [vmem:[#allocation4 + $0x4c] sm:$0xf0]  ;;  %v539_v11 = vpack.c.b16 %v437_v61, %v437_v61  ;;  %v540_v12 = vpack.c.b16 %v438_v62, %v438_v62 }
  0x1c   :  { %771 = vmatpush.bf16.msra.mxu3 %v1234_v38  ;;  %745 = vmatpush.bf16.msra.mxu1 %v1226_v42  ;;  %v1373_v8 = vld [vmem:[#allocation4 + $0xc] sm:$0xf]  ;;  %v1018_v13 = vor.u32 %v1380_v3, %v1017_v1  ;;  %v1026_v14 = vor.u32 %v1381_v5, %v1025_v4  ;;  %v1372_v15 = vld [vmem:[#allocation4 + $0x4] sm:$0xf]  ;;  %v1019_v16 = vld [vmem:[#allocation4 + $0x44] sm:$0xf0] }
  0x1d   :  { %v58_v17 = vld [vmem:[#allocation2] sm:$0x1]  ;;  %v1030_v18 = vor.u32 %v1373_v8, %v1027_v9  ;;  %v1305_v19 = vld [vmem:[#allocation4 + $0x230] sm:$0xf]  ;;  %v1450_v20 = vld [vmem:[#allocation4 + $0x270] sm:$0xf0]  ;;  %v1022_v27 = vor.u32 %v1372_v15, %v1019_v16 }
  0x1e   :  { %v690_v22 = vsel %vm676_vm0, %v537_v10, 0  ;;  %v1313_v23 = vld [vmem:[#allocation4 + $0x238] sm:$0xf]  ;;  %v1451_v24 = vld [vmem:[#allocation4 + $0x278] sm:$0xf0]  ;;  %v696_v25 = vsel %vm676_vm0, %v539_v11, 0  ;;  %v1580_v30 = vpack.c.bf16 %v58_v17, %v58_v17  ;;  %v1306_v31 = vor.u32 %v1450_v20, %v1305_v19 }
  0x1f   :  { %733 = vmatpush.bf16.msra.mxu0 %v1154_v47  ;;  %759 = vmatpush.bf16.msra.mxu2 %v1162_v48  ;;  %v699_v26 = vsel %vm676_vm0, %v540_v12, 0  ;;  %v1443_v28 = vld [vmem:[#allocation4 + $0x23c] sm:$0xf]  ;;  %v1315_v29 = vld [vmem:[#allocation4 + $0x27c] sm:$0xf0]  ;;  %v693_v32 = vsel %vm676_vm0, %v538_v21, 0  ;;  %v1314_v35 = vor.u32 %v1451_v24, %v1313_v23 }
  0x20   :  { %772 = vmatpush.bf16.msra.mxu3 %v1166_v52  ;;  %746 = vmatpush.bf16.msra.mxu1 %v1158_v56  ;;  %v1442_v33 = vld [vmem:[#allocation4 + $0x234] sm:$0xf]  ;;  %v1307_v34 = vld [vmem:[#allocation4 + $0x274] sm:$0xf0]  ;;  %v1318_v36 = vor.u32 %v1443_v28, %v1315_v29  ;;  %v1237_v37 = vld [vmem:[#allocation4 + $0x1a8] sm:$0xf] }
  0x21   :  { %v1433_v38 = vld [vmem:[#allocation4 + $0x1e8] sm:$0xf0]  ;;  %v1245_v39 = vld [vmem:[#allocation4 + $0x1b0] sm:$0xf]  ;;  %v1434_v40 = vld [vmem:[#allocation4 + $0x1f0] sm:$0xf0]  ;;  %v1310_v43 = vor.u32 %v1442_v33, %v1307_v34 }
  0x22   :  { %v1426_v41 = vld [vmem:[#allocation4 + $0x1b4] sm:$0xf]  ;;  %v1247_v42 = vld [vmem:[#allocation4 + $0x1f4] sm:$0xf0]  ;;  %v1238_v44 = vor.u32 %v1433_v38, %v1237_v37  ;;  %v1425_v45 = vld [vmem:[#allocation4 + $0x1ac] sm:$0xf]  ;;  %v1246_v47 = vor.u32 %v1434_v40, %v1245_v39 }
  0x23   :  { %734 = vmatpush.bf16.msra.mxu0 %v1086_v63  ;;  %760 = vmatpush.bf16.msra.mxu2 %v1094_v0  ;;  %v1239_v46 = vld [vmem:[#allocation4 + $0x1ec] sm:$0xf0]  ;;  %v1250_v48 = vor.u32 %v1426_v41, %v1247_v42  ;;  %v1169_v49 = vld [vmem:[#allocation4 + $0x120] sm:$0xf]  ;;  %v1416_v50 = vld [vmem:[#allocation4 + $0x160] sm:$0xf0] }
  0x24   :  { %773 = vmatpush.bf16.msra.mxu3 %v1098_v2  ;;  %747 = vmatpush.bf16.msra.mxu1 %v1090_v6  ;;  %v1177_v51 = vld [vmem:[#allocation4 + $0x128] sm:$0xf]  ;;  %v1417_v52 = vld [vmem:[#allocation4 + $0x168] sm:$0xf0]  ;;  %v1179_v54 = vld [vmem:[#allocation4 + $0x16c] sm:$0xf0]  ;;  %v1242_v55 = vor.u32 %v1425_v45, %v1239_v46  ;;  %v1170_v57 = vor.u32 %v1416_v50, %v1169_v49 }
  0x25   :  { %v1409_v53 = vld [vmem:[#allocation4 + $0x12c] sm:$0xf]  ;;  %v1408_v56 = vld [vmem:[#allocation4 + $0x124] sm:$0xf]  ;;  %v1171_v58 = vld [vmem:[#allocation4 + $0x164] sm:$0xf0]  ;;  %v1178_v61 = vor.u32 %v1417_v52, %v1177_v51 }
  0x26   :  { %v154_v59 = vld [vmem:[#allocation4 + $0x2c8] sm:$0x77]  ;;  %v155_v60 = vld [vmem:[#allocation4 + $0x2d0] sm:$0x77]  ;;  %v1182_v62 = vor.u32 %v1409_v53, %v1179_v54  ;;  %v1101_v63 = vld [vmem:[#allocation4 + $0x98] sm:$0xf]  ;;  %v1174_v5 = vor.u32 %v1408_v56, %v1171_v58 }
  0x27   :  { %735 = vmatpush.bf16.msra.mxu0 %v1018_v13  ;;  %761 = vmatpush.bf16.msra.mxu2 %v1026_v14  ;;  %v1399_v0 = vld [vmem:[#allocation4 + $0xd8] sm:$0xf0]  ;;  %v1109_v1 = vld [vmem:[#allocation4 + $0xa0] sm:$0xf]  ;;  %v1400_v2 = vld [vmem:[#allocation4 + $0xe0] sm:$0xf0]  ;;  %v439_v6 = vunpack.c.l.b16 %v154_v59  ;;  %v441_v7 = vunpack.c.l.b16 %v155_v60  ;;  %v442_v11 = vunpack.c.h.b16 %v155_v60  ;;  %v440_v20 = vunpack.c.h.b16 %v154_v59 }
  0x28   :  { %774 = vmatpush.bf16.msra.mxu3 %v1030_v18  ;;  %748 = vmatpush.bf16.msra.mxu1 %v1022_v27  ;;  %v1392_v3 = vld [vmem:[#allocation4 + $0xa4] sm:$0xf]  ;;  %v1111_v4 = vld [vmem:[#allocation4 + $0xe4] sm:$0xf0]  ;;  %v1102_v8 = vor.u32 %v1399_v0, %v1101_v63  ;;  %v1391_v9 = vld [vmem:[#allocation4 + $0x9c] sm:$0xf]  ;;  %v1110_v12 = vor.u32 %v1400_v2, %v1109_v1 }
  0x29   :  { %v1103_v10 = vld [vmem:[#allocation4 + $0xdc] sm:$0xf0]  ;;  %v1114_v13 = vor.u32 %v1392_v3, %v1111_v4  ;;  %v1033_v14 = vld [vmem:[#allocation4 + $0x10] sm:$0xf]  ;;  %v1382_v15 = vld [vmem:[#allocation4 + $0x50] sm:$0xf0]  ;;  %v543_v23 = vpack.c.b16 %v441_v7, %v441_v7  ;;  %v542_v33 = vpack.c.b16 %v440_v20, %v440_v20 }
  0x2a   :  { %1357 = vmatmul.msk.bf16.vlgmr.msra.gmra.mxu2 %vm672_vm1, %v1580_v30  ;;  %1355 = vmatmul.msk.bf16.vlgmr.msra.gmra.mxu0 %vm672_vm1, %v1580_v30  ;;  %v1041_v16 = vld [vmem:[#allocation4 + $0x18] sm:$0xf]  ;;  %v1383_v17 = vld [vmem:[#allocation4 + $0x58] sm:$0xf0]  ;;  %v1043_v19 = vld [vmem:[#allocation4 + $0x5c] sm:$0xf0]  ;;  %v1106_v21 = vor.u32 %v1391_v9, %v1103_v10  ;;  %v1034_v24 = vor.u32 %v1382_v15, %v1033_v14 }
  0x2b   :  { %782 = vmatpush.bf16.msrb.mxu0 %v690_v22  ;;  %808 = vmatpush.bf16.msrb.mxu2 %v696_v25  ;;  %v1375_v18 = vld [vmem:[#allocation4 + $0x1c] sm:$0xf]  ;;  %v541_v22 = vpack.c.b16 %v439_v6, %v439_v6  ;;  %v544_v25 = vpack.c.b16 %v442_v11, %v442_v11  ;;  %v1035_v27 = vld [vmem:[#allocation4 + $0x54] sm:$0xf0]  ;;  %v1042_v28 = vor.u32 %v1383_v17, %v1041_v16  ;;  %v1329_v37 = vld [vmem:[#allocation4 + $0x248] sm:$0xf] }
  0x2c   :  { %821 = vmatpush.bf16.msrb.mxu3 %v699_v26  ;;  %795 = vmatpush.bf16.msrb.mxu1 %v693_v32  ;;  %v1374_v26 = vld [vmem:[#allocation4 + $0x14] sm:$0xf]  ;;  %v1046_v29 = vor.u32 %v1375_v18, %v1043_v19  ;;  %v1452_v32 = vld [vmem:[#allocation4 + $0x280] sm:$0xf0]  ;;  %v1453_v38 = vld [vmem:[#allocation4 + $0x288] sm:$0xf0] }
  0x2d   :  { %1358 = vmatmul.msk.bf16.vlgmr.msra.gmra.mxu3 %vm672_vm1, %v1580_v30  ;;  %1356 = vmatmul.msk.bf16.vlgmr.msra.gmra.mxu1 %vm672_vm1, %v1580_v30  ;;  %v702_v34 = vsel %vm676_vm0, %v541_v22, 0  ;;  %v711_v39 = vsel %vm676_vm0, %v544_v25, 0  ;;  %v1445_v40 = vld [vmem:[#allocation4 + $0x24c] sm:$0xf]  ;;  %v1331_v41 = vld [vmem:[#allocation4 + $0x28c] sm:$0xf0] }
  0x2e   :  { %v1253_v42 = vld [vmem:[#allocation4 + $0x1b8] sm:$0xf]  ;;  %v705_v45 = vsel %vm676_vm0, %v542_v33, 0  ;;  %v1444_v46 = vld [vmem:[#allocation4 + $0x244] sm:$0xf]  ;;  %vm979_vm2 = vcmask 1040384  }
  0x2f   :  { %783 = vmatpush.bf16.msrb.mxu0 %v1306_v31  ;;  %809 = vmatpush.bf16.msrb.mxu2 %v1314_v35  ;;  %v1321_v31 = vld [vmem:[#allocation4 + $0x240] sm:$0xf]  ;;  %v708_v35 = vsel %vm676_vm0, %v543_v23, 0  ;;  %v1435_v49 = vld [vmem:[#allocation4 + $0x1f8] sm:$0xf0]  ;;  %vm981_vm3 = vcmask 1042434  }
  0x30   :  { %822 = vmatpush.bf16.msrb.mxu3 %v1318_v36  ;;  %796 = vmatpush.bf16.msrb.mxu1 %v1310_v43  ;;  %v1038_v36 = vor.u32 %v1374_v26, %v1035_v27  ;;  %v1322_v43 = vor.u32 %v1452_v32, %v1321_v31  ;;  %v1261_v50 = vld [vmem:[#allocation4 + $0x1c0] sm:$0xf]  ;;  %v1436_v51 = vld [vmem:[#allocation4 + $0x200] sm:$0xf0]  ;;  %v1263_v53 = vld [vmem:[#allocation4 + $0x204] sm:$0xf0] }
  0x31   :  { %v1428_v52 = vld [vmem:[#allocation4 + $0x1c4] sm:$0xf]  ;;  %v1262_v56 = vor.u32 %v1436_v51, %v1261_v50  ;;  %v1427_v58 = vld [vmem:[#allocation4 + $0x1bc] sm:$0xf]  ;;  %v1255_v59 = vld [vmem:[#allocation4 + $0x1fc] sm:$0xf0] }
  0x32   :  { %v1266_v60 = vor.u32 %v1428_v52, %v1263_v53  ;;  %v1419_v63 = vld [vmem:[#allocation4 + $0x178] sm:$0xf0]  ;;  %v1195_v1 = vld [vmem:[#allocation4 + $0x17c] sm:$0xf0]  ;;  %v1258_v2 = vor.u32 %v1427_v58, %v1255_v59  ;;  %v1117_v3 = vld [vmem:[#allocation4 + $0xa8] sm:$0xf] }
  0x33   :  { %784 = vmatpush.bf16.msrb.mxu0 %v1238_v44  ;;  %810 = vmatpush.bf16.msrb.mxu2 %v1246_v47  ;;  %v1330_v44 = vor.u32 %v1453_v38, %v1329_v37  ;;  %v1323_v47 = vld [vmem:[#allocation4 + $0x284] sm:$0xf0]  ;;  %v1411_v0 = vld [vmem:[#allocation4 + $0x13c] sm:$0xf]  ;;  %v1410_v7 = vld [vmem:[#allocation4 + $0x134] sm:$0xf] }
  0x34   :  { %823 = vmatpush.bf16.msrb.mxu3 %v1250_v48  ;;  %797 = vmatpush.bf16.msrb.mxu1 %v1242_v55  ;;  %v1334_v48 = vor.u32 %v1445_v40, %v1331_v41  ;;  %v1326_v54 = vor.u32 %v1444_v46, %v1323_v47  ;;  %v1254_v55 = vor.u32 %v1435_v49, %v1253_v42  ;;  %v156_v4 = vld [vmem:[#allocation4 + $0x2d8] sm:$0x77]  ;;  %v157_v9 = vld [vmem:[#allocation4 + $0x2e0] sm:$0x77]  ;;  %v1401_v11 = vld [vmem:[#allocation4 + $0xe8] sm:$0xf0] }
  0x35   :  { %v1198_v10 = vor.u32 %v1411_v0, %v1195_v1  ;;  %v1394_v14 = vld [vmem:[#allocation4 + $0xb4] sm:$0xf]  ;;  %v1127_v15 = vld [vmem:[#allocation4 + $0xf4] sm:$0xf0]  ;;  %v443_v16 = vunpack.c.l.b16 %v156_v4  ;;  %v445_v18 = vunpack.c.l.b16 %v157_v9  ;;  %v446_v19 = vunpack.c.h.b16 %v157_v9  ;;  %v1049_v22 = vld [vmem:[#allocation4 + $0x20] sm:$0xf] }
  0x36   :  { %v1118_v20 = vor.u32 %v1401_v11, %v1117_v3  ;;  %v1393_v23 = vld [vmem:[#allocation4 + $0xac] sm:$0xf]  ;;  %v1130_v25 = vor.u32 %v1394_v14, %v1127_v15  ;;  %v1384_v26 = vld [vmem:[#allocation4 + $0x60] sm:$0xf0]  ;;  %v1057_v27 = vld [vmem:[#allocation4 + $0x28] sm:$0xf]  ;;  %v444_v33 = vunpack.c.h.b16 %v156_v4 }
  0x37   :  { %785 = vmatpush.bf16.msrb.mxu0 %v1170_v57  ;;  %811 = vmatpush.bf16.msrb.mxu2 %v1178_v61  ;;  %v1185_v57 = vld [vmem:[#allocation4 + $0x130] sm:$0xf]  ;;  %v1418_v61 = vld [vmem:[#allocation4 + $0x170] sm:$0xf0]  ;;  %v545_v32 = vpack.c.b16 %v443_v16, %v443_v16  ;;  %v1050_v37 = vor.u32 %v1384_v26, %v1049_v22  ;;  %v1051_v40 = vld [vmem:[#allocation4 + $0x64] sm:$0xf0] }
  0x38   :  { %824 = vmatpush.bf16.msrb.mxu3 %v1182_v62  ;;  %798 = vmatpush.bf16.msrb.mxu1 %v1174_v5  ;;  %v1193_v62 = vld [vmem:[#allocation4 + $0x138] sm:$0xf]  ;;  %v1186_v5 = vor.u32 %v1418_v61, %v1185_v57  ;;  %v1059_v31 = vld [vmem:[#allocation4 + $0x6c] sm:$0xf0]  ;;  %v1455_v46 = vld [vmem:[#allocation4 + $0x298] sm:$0xf0]  ;;  %v546_v47 = vpack.c.b16 %v444_v33, %v444_v33 }
  0x39   :  { %v1194_v6 = vor.u32 %v1419_v63, %v1193_v62  ;;  %v1337_v42 = vld [vmem:[#allocation4 + $0x250] sm:$0xf]  ;;  %v1447_v51 = vld [vmem:[#allocation4 + $0x25c] sm:$0xf]  ;;  %v1347_v52 = vld [vmem:[#allocation4 + $0x29c] sm:$0xf0] }
  0x3a   :  { %v1350_v58 = vor.u32 %v1447_v51, %v1347_v52  ;;  %v717_v59 = vsel %vm676_vm0, %v546_v47, 0  ;;  %v1339_v61 = vld [vmem:[#allocation4 + $0x294] sm:$0xf0]  ;;  %v1438_v62 = vld [vmem:[#allocation4 + $0x210] sm:$0xf0]  ;;  %vm985_vm4 = vcmask 1044484  }
  0x3b   :  { %786 = vmatpush.bf16.msrb.mxu0 %v1102_v8  ;;  %812 = vmatpush.bf16.msrb.mxu2 %v1110_v12  ;;  %v1187_v8 = vld [vmem:[#allocation4 + $0x174] sm:$0xf0]  ;;  %v1125_v12 = vld [vmem:[#allocation4 + $0xb0] sm:$0xf]  ;;  %v1430_v63 = vld [vmem:[#allocation4 + $0x1d4] sm:$0xf] }
  0x3c   :  { %825 = vmatpush.bf16.msrb.mxu3 %v1114_v13  ;;  %799 = vmatpush.bf16.msrb.mxu1 %v1106_v21  ;;  %v1402_v13 = vld [vmem:[#allocation4 + $0xf0] sm:$0xf0]  ;;  %v1190_v17 = vor.u32 %v1410_v7, %v1187_v8  ;;  %v1279_v0 = vld [vmem:[#allocation4 + $0x214] sm:$0xf0]  ;;  %v1201_v3 = vld [vmem:[#allocation4 + $0x140] sm:$0xf] }
  0x3d   :  { %v1126_v21 = vor.u32 %v1402_v13, %v1125_v12  ;;  %v1420_v4 = vld [vmem:[#allocation4 + $0x180] sm:$0xf0]  ;;  %v1209_v7 = vld [vmem:[#allocation4 + $0x148] sm:$0xf]  ;;  %v1429_v8 = vld [vmem:[#allocation4 + $0x1cc] sm:$0xf] }
  0x3e   :  { %v1271_v9 = vld [vmem:[#allocation4 + $0x20c] sm:$0xf0]  ;;  %v1413_v11 = vld [vmem:[#allocation4 + $0x14c] sm:$0xf]  ;;  %v1202_v13 = vor.u32 %v1420_v4, %v1201_v3  ;;  %v1133_v15 = vld [vmem:[#allocation4 + $0xb8] sm:$0xf] }
  0x3f   :  { %787 = vmatpush.bf16.msrb.mxu0 %v1034_v24  ;;  %813 = vmatpush.bf16.msrb.mxu2 %v1042_v28  ;;  %v1119_v24 = vld [vmem:[#allocation4 + $0xec] sm:$0xf0]  ;;  %v1385_v28 = vld [vmem:[#allocation4 + $0x68] sm:$0xf0]  ;;  %v1274_v14 = vor.u32 %v1429_v8, %v1271_v9  ;;  %v1403_v16 = vld [vmem:[#allocation4 + $0xf8] sm:$0xf0] }
  0x40   :  { %826 = vmatpush.bf16.msrb.mxu3 %v1046_v29  ;;  %800 = vmatpush.bf16.msrb.mxu1 %v1038_v36  ;;  %v1377_v29 = vld [vmem:[#allocation4 + $0x2c] sm:$0xf]  ;;  %v548_v36 = vpack.c.b16 %v446_v19, %v446_v19  ;;  %v1058_v38 = vor.u32 %v1385_v28, %v1057_v27  ;;  %v1211_v12 = vld [vmem:[#allocation4 + $0x18c] sm:$0xf0]  ;;  %v1203_v22 = vld [vmem:[#allocation4 + $0x184] sm:$0xf0]  ;;  %v1134_v27 = vor.u32 %v1403_v16, %v1133_v15 }
  0x41   :  { %v1062_v41 = vor.u32 %v1377_v29, %v1059_v31  ;;  %v1214_v19 = vor.u32 %v1413_v11, %v1211_v12  ;;  %v1065_v29 = vld [vmem:[#allocation4 + $0x30] sm:$0xf]  ;;  %v1386_v31 = vld [vmem:[#allocation4 + $0x70] sm:$0xf0]  ;;  %v1285_v52 = vld [vmem:[#allocation4 + $0x1d8] sm:$0xf] }
  0x42   :  { %1361 = vmatmul.msk.bf16.vlgmr.msrb.gmra.mxu2 %vm672_vm1, %v1580_v30  ;;  %1359 = vmatmul.msk.bf16.vlgmr.msrb.gmra.mxu0 %vm672_vm1, %v1580_v30  ;;  %v723_v49 = vsel %vm676_vm0, %v548_v36, 0  ;;  %v1135_v36 = vld [vmem:[#allocation4 + $0xfc] sm:$0xf0]  ;;  %vm983_vm5 = vcmask 1041408   ;;  %vm987_vm6 = vcmask 1046534   ;;  %vm989_vm7 = vcmask 1045508  }
  0x43   :  { %834 = vmatpush.bf16.msra.mxu0 %v702_v34  ;;  %860 = vmatpush.bf16.msra.mxu2 %v708_v35  ;;  %v1122_v34 = vor.u32 %v1393_v23, %v1119_v24  ;;  %v547_v35 = vpack.c.b16 %v445_v18, %v445_v18  ;;  %v1404_v23 = vld [vmem:[#allocation4 + $0x100] sm:$0xf0]  ;;  %vm991_vm8 = vcmask 1043456  }
  0x44   :  { %873 = vmatpush.bf16.msra.mxu3 %v711_v39  ;;  %847 = vmatpush.bf16.msra.mxu1 %v705_v45  ;;  %v1376_v39 = vld [vmem:[#allocation4 + $0x24] sm:$0xf]  ;;  %v1345_v45 = vld [vmem:[#allocation4 + $0x258] sm:$0xf] }
  0x45   :  { %1362 = vmatmul.msk.bf16.vlgmr.msrb.gmra.mxu3 %vm672_vm1, %v1580_v30  ;;  %1360 = vmatmul.msk.bf16.vlgmr.msrb.gmra.mxu1 %vm672_vm1, %v1580_v30  ;;  %v1054_v50 = vor.u32 %v1376_v39, %v1051_v40  ;;  %v1346_v57 = vor.u32 %v1455_v46, %v1345_v45  ;;  %v1396_v24 = vld [vmem:[#allocation4 + $0xc4] sm:$0xf]  ;;  %v1075_v39 = vld [vmem:[#allocation4 + $0x7c] sm:$0xf0]  ;;  %v1378_v45 = vld [vmem:[#allocation4 + $0x34] sm:$0xf] }
  0x46   :  { %v1067_v46 = vld [vmem:[#allocation4 + $0x74] sm:$0xf0] }
  0x47   :  { %835 = vmatpush.bf16.msra.mxu0 %v1322_v43  ;;  %861 = vmatpush.bf16.msra.mxu2 %v1330_v44  ;;  %v1454_v43 = vld [vmem:[#allocation4 + $0x290] sm:$0xf0]  ;;  %v714_v44 = vsel %vm676_vm0, %v545_v32, 0 }
  0x48   :  { %874 = vmatpush.bf16.msra.mxu3 %v1334_v48  ;;  %848 = vmatpush.bf16.msra.mxu1 %v1326_v54  ;;  %v720_v48 = vsel %vm676_vm0, %v547_v35, 0  ;;  %v1338_v53 = vor.u32 %v1454_v43, %v1337_v42  ;;  %v1269_v54 = vld [vmem:[#allocation4 + $0x1c8] sm:$0xf]  ;;  %v1395_v35 = vld [vmem:[#allocation4 + $0xbc] sm:$0xf] }
  0x49   :  { %v1138_v42 = vor.u32 %v1395_v35, %v1135_v36 }
  0x4b   :  { %836 = vmatpush.bf16.msra.mxu0 %v1254_v55  ;;  %862 = vmatpush.bf16.msra.mxu2 %v1262_v56  ;;  %v1437_v55 = vld [vmem:[#allocation4 + $0x208] sm:$0xf0]  ;;  %v1277_v56 = vld [vmem:[#allocation4 + $0x1d0] sm:$0xf] }
  0x4c   :  { %875 = vmatpush.bf16.msra.mxu3 %v1266_v60  ;;  %849 = vmatpush.bf16.msra.mxu1 %v1258_v2  ;;  %v1446_v60 = vld [vmem:[#allocation4 + $0x254] sm:$0xf]  ;;  %v1270_v1 = vor.u32 %v1437_v55, %v1269_v54  ;;  %v1217_v55 = vld [vmem:[#allocation4 + $0x150] sm:$0xf] }
  0x4d   :  { %v1342_v2 = vor.u32 %v1446_v60, %v1339_v61  ;;  %v1081_v61 = vld [vmem:[#allocation4 + $0x40] sm:$0xf] }
  0x4f   :  { %837 = vmatpush.bf16.msra.mxu0 %v1186_v5  ;;  %863 = vmatpush.bf16.msra.mxu2 %v1194_v6  ;;  %v1278_v5 = vor.u32 %v1438_v62, %v1277_v56  ;;  %v1282_v6 = vor.u32 %v1430_v63, %v1279_v0  ;;  %v1422_v56 = vld [vmem:[#allocation4 + $0x190] sm:$0xf0]  ;;  %v1388_v62 = vld [vmem:[#allocation4 + $0x80] sm:$0xf0] }
  0x50   :  { %876 = vmatpush.bf16.msra.mxu3 %v1198_v10  ;;  %850 = vmatpush.bf16.msra.mxu1 %v1190_v17  ;;  %v1421_v10 = vld [vmem:[#allocation4 + $0x188] sm:$0xf0]  ;;  %v158_v17 = vld [vmem:[#allocation4 + $0x2e8] sm:$0x7]  ;;  %v1082_v63 = vor.u32 %v1388_v62, %v1081_v61 }
  0x51   :  { %v1210_v18 = vor.u32 %v1421_v10, %v1209_v7  ;;  %v447_v26 = vunpack.c.l.b16 %v158_v17  ;;  %v159_v7 = vld [vmem:[#allocation6] sm:$0xff] }
  0x52   :  { %v639_v9 = vperm.slane %v159_v7, 1  ;;  %v640_v10 = vperm.slane %v159_v7, 2  ;;  %v641_v11 = vperm.slane %v159_v7, 3  ;;  %v642_v12 = vperm.slane %v159_v7, 4 }
  0x53   :  { %838 = vmatpush.bf16.msra.mxu0 %v1118_v20  ;;  %864 = vmatpush.bf16.msra.mxu2 %v1126_v21  ;;  %v1141_v20 = vld [vmem:[#allocation4 + $0xc0] sm:$0xf]  ;;  %v1412_v21 = vld [vmem:[#allocation4 + $0x144] sm:$0xf]  ;;  %v549_v40 = vpack.c.b16 %v447_v26, %v447_v26  ;;  %v643_v15 = vperm.slane %v159_v7, 5 }
  0x54   :  { %877 = vmatpush.bf16.msra.mxu3 %v1130_v25  ;;  %851 = vmatpush.bf16.msra.mxu1 %v1122_v34  ;;  %v1143_v25 = vld [vmem:[#allocation4 + $0x104] sm:$0xf0]  ;;  %v1206_v28 = vor.u32 %v1412_v21, %v1203_v22  ;;  %v1142_v32 = vor.u32 %v1404_v23, %v1141_v20  ;;  %v1073_v34 = vld [vmem:[#allocation4 + $0x38] sm:$0xf]  ;;  %v644_v20 = vperm.slane %v159_v7, 6  ;;  %v645_v21 = vperm.slane %v159_v7, 7 }
  0x55   :  { %v1146_v33 = vor.u32 %v1396_v24, %v1143_v25  ;;  %v726_v47 = vsel %vm676_vm0, %v549_v40, 0 }
  0x57   :  { %839 = vmatpush.bf16.msra.mxu0 %v1050_v37  ;;  %865 = vmatpush.bf16.msra.mxu2 %v1058_v38  ;;  %v1387_v37 = vld [vmem:[#allocation4 + $0x78] sm:$0xf0] }
  0x58   :  { %878 = vmatpush.bf16.msra.mxu3 %v1062_v41  ;;  %852 = vmatpush.bf16.msra.mxu1 %v1054_v50  ;;  %v1379_v38 = vld [vmem:[#allocation4 + $0x3c] sm:$0xf]  ;;  %v1066_v41 = vor.u32 %v1386_v31, %v1065_v29  ;;  %v1074_v43 = vor.u32 %v1387_v37, %v1073_v34  ;;  %v1070_v50 = vor.u32 %v1378_v45, %v1067_v46 }
  0x5a   :  { %1363 = vmatmul.msk.bf16.vlgmr.msra.gmra.mxu0 %vm672_vm1, %v1580_v30  ;;  %1365 = vmatmul.msk.bf16.vlgmr.msra.gmra.mxu2 %vm672_vm1, %v1580_v30 }
  0x5b   :  { %886 = vmatpush.bf16.msrb.mxu0 %v714_v44  ;;  %912 = vmatpush.bf16.msrb.mxu2 %v720_v48  ;;  %v1078_v44 = vor.u32 %v1379_v38, %v1075_v39  ;;  %v1353_v48 = vld [vmem:[#allocation4 + $0x260] sm:$0xf] }
  0x5c   :  { %925 = vmatpush.bf16.msrb.mxu3 %v723_v49  ;;  %899 = vmatpush.bf16.msrb.mxu1 %v717_v59  ;;  %v1456_v49 = vld [vmem:[#allocation4 + $0x2a0] sm:$0xf0]  ;;  %v1405_v59 = vld [vmem:[#allocation4 + $0x108] sm:$0xf0] }
  0x5d   :  { %1366 = vmatmul.msk.bf16.vlgmr.msra.gmra.mxu3 %vm672_vm1, %v1580_v30  ;;  %1364 = vmatmul.msk.bf16.vlgmr.msra.gmra.mxu1 %vm672_vm1, %v1580_v30  ;;  %v1354_v51 = vor.u32 %v1456_v49, %v1353_v48 }
  0x5f   :  { %887 = vmatpush.bf16.msrb.mxu0 %v1338_v53  ;;  %913 = vmatpush.bf16.msrb.mxu2 %v1346_v57  ;;  %v1439_v53 = vld [vmem:[#allocation4 + $0x218] sm:$0xf0]  ;;  %v1218_v57 = vor.u32 %v1422_v56, %v1217_v55 }
  0x60   :  { %926 = vmatpush.bf16.msrb.mxu3 %v1350_v58  ;;  %900 = vmatpush.bf16.msrb.mxu1 %v1342_v2  ;;  %v1286_v54 = vor.u32 %v1439_v53, %v1285_v52  ;;  %v1149_v58 = vld [vmem:[#allocation4 + $0xc8] sm:$0xf]  ;;  %v160_v53 = vld [vmem:[#allocation6 + $0x8] sm:$0xff] }
  0x61   :  { %v1150_v60 = vor.u32 %v1405_v59, %v1149_v58  ;;  %v647_v56 = vperm.slane %v160_v53, 1  ;;  %v649_v58 = vperm.slane %v160_v53, 3  ;;  %v650_v59 = vperm.slane %v160_v53, 4 }
  0x62   :  { %v646_v61 = vperm.slane %v160_v53, 0 }
  0x63   :  { %888 = vmatpush.bf16.msrb.mxu0 %v1270_v1  ;;  %914 = vmatpush.bf16.msrb.mxu2 %v1278_v5 }
  0x64   :  { %927 = vmatpush.bf16.msrb.mxu3 %v1282_v6  ;;  %901 = vmatpush.bf16.msrb.mxu1 %v1274_v14 }
  0x67   :  { %889 = vmatpush.bf16.msrb.mxu0 %v1202_v13  ;;  %915 = vmatpush.bf16.msrb.mxu2 %v1210_v18  ;;  %v638_v13 = vperm.slane %v159_v7, 0 }
  0x68   :  { %928 = vmatpush.bf16.msrb.mxu3 %v1214_v19  ;;  %902 = vmatpush.bf16.msrb.mxu1 %v1206_v28 }
  0x6b   :  { %890 = vmatpush.bf16.msrb.mxu0 %v1134_v27  ;;  %916 = vmatpush.bf16.msrb.mxu2 %v1142_v32 }
  0x6c   :  { %929 = vmatpush.bf16.msrb.mxu3 %v1146_v33  ;;  %903 = vmatpush.bf16.msrb.mxu1 %v1138_v42 }
  0x6f   :  { %891 = vmatpush.bf16.msrb.mxu0 %v1066_v41  ;;  %917 = vmatpush.bf16.msrb.mxu2 %v1074_v43 }
  0x70   :  { %930 = vmatpush.bf16.msrb.mxu3 %v1078_v44  ;;  %904 = vmatpush.bf16.msrb.mxu1 %v1070_v50 }
  0x72   :  { %1367 = vmatmul.msk.bf16.vlgmr.msrb.gmra.mxu0 %vm672_vm1, %v1580_v30  ;;  %1369 = vmatmul.msk.bf16.vlgmr.msrb.gmra.mxu2 %vm672_vm1, %v1580_v30 }
  0x73   :  { %938 = vmatpush.bf16.msra.mxu0 %v726_v47  ;;  %1370 = vmatmul.msk.bf16.vlgmr.msrb.gmra.mxu3 %vm672_vm1, %v1580_v30 }
  0x74   :  { %1368 = vmatmul.msk.bf16.vlgmr.msrb.gmra.mxu1 %vm672_vm1, %v1580_v30 }
  0x77   :  { %939 = vmatpush.bf16.msra.mxu0 %v1354_v51 }
  0x7b   :  { %940 = vmatpush.bf16.msra.mxu0 %v1286_v54 }
  0x7f   :  { %941 = vmatpush.bf16.msra.mxu0 %v1218_v57  ;;  %v648_v57 = vperm.slane %v160_v53, 2 }
  0x83   :  { %942 = vmatpush.bf16.msra.mxu0 %v1150_v60 }
  0x87   :  { %943 = vmatpush.bf16.msra.mxu0 %v1082_v63 }
  0x8a   :  { %1371 = vmatmul.msk.bf16.vlgmr.msra.gmra.mxu0 %vm672_vm1, %v1580_v30 }
  0xa7   :  { %v737_v0 = vpop.f32.mrf.mxu0 }
  0xa8   :  { %v738_v22 = vadd.f32 %v737_v0, %v638_v13 }
  0xaa   :  { %v750_v1 = vpop.f32.mrf.mxu1 }
  0xab   :  { %v751_v14 = vadd.f32 %v750_v1, %v639_v9 }
  0xad   :  { %v763_v2 = vpop.f32.mrf.mxu2  ;;  %v965_v23 = vrot.slane %v751_v14, 7 }
  0xae   :  { %v764_v16 = vadd.f32 %v763_v2, %v640_v10  ;;  %v651_v2 = vperm.slane %v160_v53, 5 }
  0xaf   :  { %v739_v4 = vpop.f32.mrf.mxu0  ;;  %v980_v34 = vsel %vm979_vm2, %v738_v22, %v965_v23 }
  0xb0   :  { %v776_v3 = vpop.f32.mrf.mxu3  ;;  %v966_v25 = vrot.slane %v764_v16, 6  ;;  %v653_v4 = vperm.slane %v160_v53, 7 }
  0xb1   :  { %v777_v17 = vadd.f32 %v776_v3, %v641_v11  ;;  %v652_v3 = vperm.slane %v160_v53, 6 }
  0xb2   :  { %v752_v5 = vpop.f32.mrf.mxu1 }
  0xb3   :  { %v967_v26 = vrot.slane %v777_v17, 5 }
  0xb5   :  { %v765_v6 = vpop.f32.mrf.mxu2  ;;  %v982_v35 = vsel %vm981_vm3, %v966_v25, %v967_v26 }
  0xb6   :  { %v984_v42 = vsel %vm983_vm5, %v980_v34, %v982_v35 }
  0xb8   :  { %v778_v8 = vpop.f32.mrf.mxu3 }
  0xbf   :  { %v789_v18 = vpop.f32.mrf.mxu0 }
  0xc0   :  { %v790_v30 = vadd.f32 %v789_v18, %v642_v12 }
  0xc2   :  { %v802_v19 = vpop.f32.mrf.mxu1  ;;  %v968_v27 = vrot.slane %v790_v30, 4 }
  0xc3   :  { %v803_v24 = vadd.f32 %v802_v19, %v643_v15 }
  0xc5   :  { %v969_v28 = vrot.slane %v803_v24, 3  ;;  %v815_v29 = vpop.f32.mrf.mxu2 }
  0xc6   :  { %v816_v32 = vadd.f32 %v815_v29, %v644_v20  ;;  %v1004_v29 = vlaneseq }
  0xc7   :  { %v986_v36 = vsel %vm985_vm4, %v968_v27, %v969_v28  ;;  %v791_v39 = vpop.f32.mrf.mxu0 }
  0xc8   :  { %v828_v31 = vpop.f32.mrf.mxu3  ;;  %v970_v37 = vrot.slane %v816_v32, 2  ;;  %vm1006_vm9 = vcmp.lt.s32.totalorder %v1004_v29, 128 }
  0xc9   :  { %v829_v33 = vadd.f32 %v828_v31, %v645_v21  ;;  %v1462_v31 = vld [vmem:[#allocation6 + $0x10] ss:$0 sm:$0xff] }
  0xca   :  { %v804_v41 = vpop.f32.mrf.mxu1 }
  0xcb   :  { %v971_v38 = vrot.slane %v829_v33, 1 }
  0xcd   :  { %v988_v40 = vsel %vm987_vm6, %v970_v37, %v971_v38  ;;  %v817_v45 = vpop.f32.mrf.mxu2 }
  0xce   :  { %v990_v43 = vsel %vm989_vm7, %v986_v36, %v988_v40 }
  0xcf   :  { %v992_v44 = vsel %vm991_vm8, %v984_v42, %v990_v43 }
  0xd0   :  { %1002 = vst [vmem:[%s1652_s3] sm:$0xff] %v992_v44  ;;  %v830_v46 = vpop.f32.mrf.mxu3 }
  0xd7   :  { %v841_v47 = vpop.f32.mrf.mxu0 }
  0xd8   :  { %v842_v5 = vadd.f32 %v841_v47, %v646_v61 }
  0xda   :  { %v854_v48 = vpop.f32.mrf.mxu1 }
  0xdb   :  { %v855_v62 = vadd.f32 %v854_v48, %v647_v56 }
  0xdd   :  { %v867_v49 = vpop.f32.mrf.mxu2  ;;  %v972_v6 = vrot.slane %v855_v62, 7 }
  0xde   :  { %v868_v63 = vadd.f32 %v867_v49, %v648_v57 }
  0xdf   :  { %v843_v51 = vpop.f32.mrf.mxu0  ;;  %v993_v18 = vsel %vm979_vm2, %v842_v5, %v972_v6 }
  0xe0   :  { %v880_v50 = vpop.f32.mrf.mxu3  ;;  %v973_v8 = vrot.slane %v868_v63, 6 }
  0xe1   :  { %v881_v0 = vadd.f32 %v880_v50, %v649_v58 }
  0xe2   :  { %v856_v52 = vpop.f32.mrf.mxu1 }
  0xe3   :  { %v974_v9 = vrot.slane %v881_v0, 5 }
  0xe5   :  { %v869_v54 = vpop.f32.mrf.mxu2  ;;  %v994_v30 = vsel %vm981_vm3, %v973_v8, %v974_v9 }
  0xe6   :  { %v995_v23 = vsel %vm983_vm5, %v993_v18, %v994_v30 }
  0xe8   :  { %v882_v55 = vpop.f32.mrf.mxu3 }
  0xef   :  { %v893_v60 = vpop.f32.mrf.mxu0 }
  0xf0   :  { %v894_v1 = vadd.f32 %v893_v60, %v650_v59 }
  0xf1   :  { %v906_v7 = vpop.f32.mrf.mxu1 }
  0xf2   :  { %v975_v10 = vrot.slane %v894_v1, 4  ;;  %v907_v11 = vadd.f32 %v906_v7, %v651_v2 }
  0xf4   :  { %v976_v14 = vrot.slane %v907_v11, 3 }
  0xf5   :  { %v919_v12 = vpop.f32.mrf.mxu2 }
  0xf6   :  { %v932_v13 = vpop.f32.mrf.mxu3  ;;  %v920_v15 = vadd.f32 %v919_v12, %v652_v3  ;;  %v996_v19 = vsel %vm985_vm4, %v975_v10, %v976_v14 }
  0xf7   :  { %v933_v16 = vadd.f32 %v932_v13, %v653_v4  ;;  %v895_v17 = vpop.f32.mrf.mxu0 }
  0xf8   :  { %v977_v20 = vrot.slane %v920_v15, 2 }
  0xf9   :  { %v978_v21 = vrot.slane %v933_v16, 1  ;;  %v908_v25 = vpop.f32.mrf.mxu1 }
  0xfb   :  { %v997_v22 = vsel %vm987_vm6, %v977_v20, %v978_v21 }
  0xfc   :  { %v998_v24 = vsel %vm989_vm7, %v996_v19, %v997_v22 }
  0xfd   :  { %v999_v26 = vsel %vm991_vm8, %v995_v23, %v998_v24  ;;  %v921_v27 = vpop.f32.mrf.mxu2 }
  0xfe   :  { %1003 = vst [vmem:[%s1652_s3 + $0x8] sm:$0xff] %v999_v26  ;;  %v934_v28 = vpop.f32.mrf.mxu3 }
 0x107   :  { %v945_v32 = vpop.f32.mrf.mxu0 }
 0x108   :  { %v946_v33 = vadd.f32 %v1462_v31, %v945_v32 }
 0x10a   :  { %1008 = vst.msk [vmem:[%s1652_s3 + $0x10] sm:$0x1] %vm1006_vm9, %v946_v33 }
 0x10f   :  { %v947_v34 = vpop.f32.mrf.mxu0 }
 0x110   :  { %1013 = vsyncpa [#allocation3], 1 }
 0x111   :  { %1014 = vsyncpa [#allocation5], 1 }

</bundles_post_ra>
